<compile_context>
chip_gen: v5e
topology: v5e:2x2
jax: 0.10.0
libtpu: 0.0.40
codegen_flags: <defaults>
</compile_context>

<pallas_src>
import jax
import jax.numpy as jnp
from jax.experimental import pallas as pl
from jax.experimental.pallas import tpu as pltpu


def _round_up(x: int, m: int) -> int:
    return ((x + m - 1) // m) * m


def _task_encoder_kernel(s_ref, p_ref, ws_ref, wp_ref, b_ref, o_ref):
    # s_ref: [bm, input_dim], p_ref: [bm, pos_dim]
    # ws_ref: [input_dim, H_pad] (resident), wp_ref: [pos_dim, H_pad] (resident)
    # b_ref: [1, H_pad] float32 (folded b_s + b_p)
    acc = jnp.dot(s_ref[...], ws_ref[...], preferred_element_type=jnp.float32)
    acc = acc + jnp.dot(p_ref[...], wp_ref[...], preferred_element_type=jnp.float32)
    o_ref[...] = (acc + b_ref[...]).astype(o_ref.dtype)


def make_task_encoder(w_s, b_s, w_p, b_p, *, bm=2048, compute_dtype=None):
    """Fold/pad parameters once; return a jitted (ellipse_symbols, positions) -> [B, H]."""
    input_dim, H = w_s.shape
    pos_dim = w_p.shape[0]

    # Lane-dense padding only pays off for large ragged H; for tiny H the un-padded
    # (masked-store) output moves far fewer HBM bytes and needs no post-slice.
    if H < 128 or H % 128 == 0:
        H_pad = H
    else:
        H_pad = _round_up(H, 128)

    # Fold biases once; keep in float32 against the f32 accumulator (correctness note).
    b = (b_s.astype(jnp.float32) + b_p.astype(jnp.float32)).reshape(1, H)
    if H_pad != H:
        b = jnp.pad(b, ((0, 0), (0, H_pad - H)))
        w_s = jnp.pad(w_s, ((0, 0), (0, H_pad - H)))
        w_p = jnp.pad(w_p, ((0, 0), (0, H_pad - H)))
    if compute_dtype is not None:
        # Optional bf16 path: halves weight/activation HBM bytes; slightly changes numerics.
        w_s = w_s.astype(compute_dtype)
        w_p = w_p.astype(compute_dtype)

    def forward(ellipse_symbols, positions):
        B, in_d = ellipse_symbols.shape
        assert in_d == input_dim and positions.shape[1] == pos_dim
        out_dtype = ellipse_symbols.dtype
        if compute_dtype is not None:
            ellipse_symbols = ellipse_symbols.astype(compute_dtype)
            positions = positions.astype(compute_dtype)
        act_itemsize = jnp.dtype(ellipse_symbols.dtype).itemsize
        out_itemsize = jnp.dtype(out_dtype).itemsize

        # Batch tile: multiple of 8, capped at the (8-rounded) batch; B itself is NOT padded.
        tile = max(8, min(bm, _round_up(B, 8)))
        tile = _round_up(tile, 8)

        # v7x megacore hint: for large batches keep >= 2 grid steps so both TCs get work.
        if B >= 256:
            tile = min(tile, _round_up(pl.cdiv(B, 2), 8))

        # VMEM guard (v7x: 64 MiB physical / 32 MiB scoped default): double-buffered
        # activation + output tiles plus (double-buffered) weights and bias must fit.
        budget = 24 * 1024 * 1024

        def vmem_bytes(t):
            per_step = (t * (input_dim + pos_dim) * act_itemsize
                        + t * H_pad * out_itemsize)
            weights = (input_dim + pos_dim) * H_pad * act_itemsize + H_pad * 4
            return 2 * per_step + 2 * weights

        while tile > 8 and vmem_bytes(tile) > budget:
            tile = max(8, _round_up(tile // 2, 8))

        grid = (pl.cdiv(B, tile),)

        cost = pl.CostEstimate(
            flops=2 * B * (input_dim + pos_dim) * H_pad,
            transcendentals=0,
            bytes_accessed=(ellipse_symbols.size + positions.size) * act_itemsize
            + (w_s.size + w_p.size) * act_itemsize
            + b.size * 4
            + B * H_pad * out_itemsize,
        )

        out = pl.pallas_call(
            _task_encoder_kernel,
            out_shape=jax.ShapeDtypeStruct((B, H_pad), out_dtype),
            grid_spec=pltpu.PrefetchScalarGridSpec(
                num_scalar_prefetch=0,
                grid=grid,
                in_specs=[
                    pl.BlockSpec((tile, input_dim), lambda i: (i, 0)),   # symbols tile
                    pl.BlockSpec((tile, pos_dim), lambda i: (i, 0)),     # positions tile
                    pl.BlockSpec((input_dim, H_pad), lambda i: (0, 0)),  # w_s (resident)
                    pl.BlockSpec((pos_dim, H_pad), lambda i: (0, 0)),    # w_p (resident)
                    pl.BlockSpec((1, H_pad), lambda i: (0, 0)),          # folded bias
                ],
                out_specs=pl.BlockSpec((tile, H_pad), lambda i: (i, 0)),
            ),
            compiler_params=pltpu.CompilerParams(
                dimension_semantics=("parallel",),
            ),
            cost_estimate=cost,
        )(ellipse_symbols, positions, w_s, w_p, b)

        if H_pad != H:
            out = out[:, :H]
        return out

    return jax.jit(forward)


if __name__ == "__main__":
    # Small shapes consistent with the module.
    B = 8
    input_dim = 16
    hidden_dim = 32
    pos_dim = 2 * 10  # fixed by the module: Linear(2*10, hidden_dim)

    key = jax.random.PRNGKey(0)
    k1, k2, k3, k4, k5, k6 = jax.random.split(key, 6)

    # Deterministic synthetic parameters (PyTorch-Linear-like scale), already [in, out].
    w_s = jax.random.uniform(k1, (input_dim, hidden_dim), jnp.float32,
                             minval=-1.0, maxval=1.0) / jnp.sqrt(input_dim)
    b_s = jax.random.uniform(k2, (hidden_dim,), jnp.float32,
                             minval=-1.0, maxval=1.0) / jnp.sqrt(input_dim)
    w_p = jax.random.uniform(k3, (pos_dim, hidden_dim), jnp.float32,
                             minval=-1.0, maxval=1.0) / jnp.sqrt(pos_dim)
    b_p = jax.random.uniform(k4, (hidden_dim,), jnp.float32,
                             minval=-1.0, maxval=1.0) / jnp.sqrt(pos_dim)

    ellipse_symbols = jax.random.normal(k5, (B, input_dim), jnp.float32)
    positions = jax.random.normal(k6, (B, pos_dim), jnp.float32)

    encoder = make_task_encoder(w_s, b_s, w_p, b_p)
    out = encoder(ellipse_symbols, positions)
    out = jax.block_until_ready(out)

    # Pure-JAX reference (highest-precision dots).  Tolerance is kept moderately loose
    # because XLA's default f32 matmul precision on TPU MXUs may differ slightly from
    # the in-kernel f32 matmul path; real mistakes (missing term / bias) are O(1) errors.
    ref = (jnp.dot(ellipse_symbols, w_s, precision=jax.lax.Precision.HIGHEST) + b_s) + \
          (jnp.dot(positions, w_p, precision=jax.lax.Precision.HIGHEST) + b_p)
    assert out.shape == (B, hidden_dim)
    assert jnp.allclose(out, ref, atol=2e-2, rtol=2e-2), "mismatch vs reference"

    print("KERNEL_OK")
</pallas_src>

<mosaic_0001>
module attributes {stable_mosaic.version = 11 : i64} {
  func.func @_task_encoder_kernel(%arg0: i32, %arg1: memref<8x16xf32, #tpu.memory_space<vmem>>, %arg2: memref<8x20xf32, #tpu.memory_space<vmem>>, %arg3: memref<16x32xf32, #tpu.memory_space<vmem>>, %arg4: memref<20x32xf32, #tpu.memory_space<vmem>>, %arg5: memref<1x32xf32, #tpu.memory_space<vmem>>, %arg6: memref<8x32xf32, #tpu.memory_space<vmem>>) attributes {dimension_semantics = [#tpu.dimension_semantics<parallel>], iteration_bounds = array<i64: 1>, scalar_prefetch = 0 : i64, scratch_operands = 0 : i64, tpu.core_type = #tpu.core_type<tc>, window_params = [{transform_indices = @transform_0, window_bounds = array<i64: 8, 16>}, {transform_indices = @transform_1, window_bounds = array<i64: 8, 20>}, {pipeline_mode = #tpu.pipeline_mode<synchronous>, transform_indices = @transform_2, window_bounds = array<i64: 16, 32>}, {pipeline_mode = #tpu.pipeline_mode<synchronous>, transform_indices = @transform_3, window_bounds = array<i64: 20, 32>}, {pipeline_mode = #tpu.pipeline_mode<synchronous>, transform_indices = @transform_4, window_bounds = array<i64: 1, 32>}, {transform_indices = @transform_5, window_bounds = array<i64: 8, 32>}]} {
    %c0 = arith.constant 0 : index
    %c0_0 = arith.constant 0 : index
    %0 = vector.load %arg1[%c0, %c0_0] : memref<8x16xf32, #tpu.memory_space<vmem>>, vector<8x16xf32>
    %c0_1 = arith.constant 0 : index
    %c0_2 = arith.constant 0 : index
    %1 = vector.load %arg3[%c0_1, %c0_2] : memref<16x32xf32, #tpu.memory_space<vmem>>, vector<16x32xf32>
    %cst = arith.constant dense<0.000000e+00> : vector<8x32xf32>
    %2 = tpu.matmul %0, %1, %cst {dimension_numbers = #tpu.dot_dimension_numbers<[1], [0], [0], [1], [0, 0, 1, 1], [], []>} : vector<8x16xf32>, vector<16x32xf32>, vector<8x32xf32> -> vector<8x32xf32>
    %c0_3 = arith.constant 0 : index
    %c0_4 = arith.constant 0 : index
    %3 = vector.load %arg2[%c0_3, %c0_4] : memref<8x20xf32, #tpu.memory_space<vmem>>, vector<8x20xf32>
    %c0_5 = arith.constant 0 : index
    %c0_6 = arith.constant 0 : index
    %4 = vector.load %arg4[%c0_5, %c0_6] : memref<20x32xf32, #tpu.memory_space<vmem>>, vector<20x32xf32>
    %cst_7 = arith.constant dense<0.000000e+00> : vector<8x32xf32>
    %5 = tpu.matmul %3, %4, %cst_7 {dimension_numbers = #tpu.dot_dimension_numbers<[1], [0], [0], [1], [0, 0, 1, 1], [], []>} : vector<8x20xf32>, vector<20x32xf32>, vector<8x32xf32> -> vector<8x32xf32>
    %6 = arith.addf %2, %5 : vector<8x32xf32>
    %c0_8 = arith.constant 0 : index
    %c0_9 = arith.constant 0 : index
    %7 = vector.load %arg5[%c0_8, %c0_9] : memref<1x32xf32, #tpu.memory_space<vmem>>, vector<1x32xf32>
    %8 = vector.broadcast %7 : vector<1x32xf32> to vector<8x32xf32>
    %9 = arith.addf %6, %8 : vector<8x32xf32>
    %c0_10 = arith.constant 0 : index
    %c0_11 = arith.constant 0 : index
    %10 = vector.load %arg6[%c0_10, %c0_11] : memref<8x32xf32, #tpu.memory_space<vmem>>, vector<8x32xf32>
    tpu.vector_store %arg6[%c0_10, %c0_11], %9 {strides = array<i32>} : memref<8x32xf32, #tpu.memory_space<vmem>>, vector<8x32xf32>,
    return
  }
  func.func @transform_0(%arg0: i32) -> (i32, i32) {
    %c0_i32 = arith.constant 0 : i32
    %c0_i32_0 = arith.constant 0 : i32
    return %arg0, %c0_i32 : i32, i32
  }
  func.func @transform_1(%arg0: i32) -> (i32, i32) {
    %c0_i32 = arith.constant 0 : i32
    %c0_i32_0 = arith.constant 0 : i32
    return %arg0, %c0_i32 : i32, i32
  }
  func.func @transform_2(%arg0: i32) -> (i32, i32) {
    %c0_i32 = arith.constant 0 : i32
    %c0_i32_0 = arith.constant 0 : i32
    %c0_i32_1 = arith.constant 0 : i32
    return %c0_i32, %c0_i32_0 : i32, i32
  }
  func.func @transform_3(%arg0: i32) -> (i32, i32) {
    %c0_i32 = arith.constant 0 : i32
    %c0_i32_0 = arith.constant 0 : i32
    %c0_i32_1 = arith.constant 0 : i32
    return %c0_i32, %c0_i32_0 : i32, i32
  }
  func.func @transform_4(%arg0: i32) -> (i32, i32) {
    %c0_i32 = arith.constant 0 : i32
    %c0_i32_0 = arith.constant 0 : i32
    %c0_i32_1 = arith.constant 0 : i32
    return %c0_i32, %c0_i32_0 : i32, i32
  }
  func.func @transform_5(%arg0: i32) -> (i32, i32) {
    %c0_i32 = arith.constant 0 : i32
    %c0_i32_0 = arith.constant 0 : i32
    return %arg0, %c0_i32 : i32, i32
  }
}

</mosaic_0001>

<bundles_post_ra>
// kernel: forward.1
= control target key start
LH: loop header
LB: loop body
LE: loop exit
PB: predicated region body
PF: predicated region fallthrough
CT: control target
= control target key end

     0   :  { %10 = vsyncpa [#allocation3], 0  ;;  %s359_s0 = inlined_call_operand.hbm [shape: f32[8,16], index: 0, kind: input, shape index: {}]   ;;  %s360_s1 = inlined_call_operand.hbm [shape: f32[8,20], index: 1, kind: input, shape index: {}]   ;;  %s361_s2 = inlined_call_operand.hbm [shape: f32[16,32], index: 2, kind: input, shape index: {}]   ;;  %s362_s3 = inlined_call_operand.hbm [shape: f32[20,32], index: 3, kind: input, shape index: {}]   ;;  %s363_s4 = inlined_call_operand.vmem [shape: f32[1,32], index: 4, kind: input, shape index: {}]   ;;  %s364_s5 = inlined_call_operand.hbm [shape: f32[8,32], index: 5, kind: output, shape index: {}]  }
   0x1   :  { %11 = vsyncpa [#allocation6], 0 }
   0x2   :  { %12 = vsyncpa [#allocation9], 0  ;;  %s30_s20 = sshll.u32 %s360_s1, 4  ;;  %s31_s20 = int_to_ptr.hbm [resolvable:$true] %s30_s20 }
   0x3   :  { %13 = vsyncpa [#allocation4], 0  ;;  %s304_s21 = smov [#allocation5]   ;;  %s19_s25 = sshll.u32 %s359_s0, 4  ;;  %s20_s25 = int_to_ptr.hbm [resolvable:$true] %s19_s25 }
   0x4   :  { %s32_s22 = sshll.u32 %s304_s21, 4  ;;  %s305_s26 = smov [#allocation2]   ;;  %s33_s22 = int_to_ptr.vmem [resolvable:$true] %s32_s22 }
   0x5   :  { %35 = dma.hbm_to_vmem [thread:$0]  %s31_s20, 128, %s33_s22, [#allocation6]  }
   0x6   :  { %s21_s27 = sshll.u32 %s305_s26, 4  ;;  %s40_s30 = sshll.u32 %s361_s2, 4  ;;  %s22_s27 = int_to_ptr.vmem [resolvable:$true] %s21_s27  ;;  %s41_s30 = int_to_ptr.hbm [resolvable:$true] %s40_s30 }
   0x7   :  { %24 = dma.hbm_to_vmem [thread:$0]  %s20_s25, 128, %s22_s27, [#allocation3]  }
   0x8   :  { %s306_s1 = smov [#allocation7]   ;;  %s53_s9 = sshll.u32 %s362_s3, 4  ;;  %s54_s9 = int_to_ptr.hbm [resolvable:$true] %s53_s9 }
   0x9   :  { %s42_s6 = sshll.u32 %s306_s1, 4  ;;  %s307_s10 = smov 128   ;;  %s43_s6 = int_to_ptr.vmem [resolvable:$true] %s42_s6 }
   0xa   :  { %s308_s0 = smov 8   ;;  %s309_s11 = smov [#allocation8]  }
   0xb   :  { %48 = dma.hbm_to_vmem [thread:$0]  %s41_s30, 256, %s43_s6, [#allocation6], %s307_s10, %s307_s10, %s308_s0  }
   0xc   :  { %s55_s12 = sshll.u32 %s309_s11, 4  ;;  %s56_s12 = int_to_ptr.vmem [resolvable:$true] %s55_s12 }
   0xd   :  { %61 = dma.hbm_to_vmem [thread:$0]  %s54_s9, 384, %s56_s12, [#allocation9], %s307_s10, %s307_s10, %s308_s0  }
   0xe   :  { %296 = dma.done.wait [#allocation3], 128  }
   0xf   :  { %297 = vsyncadd [#allocation3], 4294967168 }
  0x10   :  { %298 = dma.done.wait [#allocation6], 384  }
  0x11   :  { %299 = vsyncadd [#allocation6], 4294966912 }
  0x12   :  { %300 = dma.done.wait [#allocation9], 384  }
  0x13   :  { %301 = vsyncadd [#allocation9], 4294966912  ;;  %vm91_vm0 = vcmask 1043456   ;;  %v86_v0 = vld [vmem:[#allocation8 + $0x10] sm:$0xf]  ;;  %v85_v1 = vld [vmem:[#allocation8 + $0x8] sm:$0xff] }
  0x14   :  { %v82_v2 = vld [vmem:[#allocation7 + $0x8] sm:$0xff]  ;;  %165 = vmatpush.msk.msra.mxu0 %vm91_vm0, %v86_v0  ;;  %v81_v3 = vld [vmem:[#allocation7] sm:$0xff]  ;;  %vm115_vm1 = vcmask 130048   ;;  %v84_v4 = vld [vmem:[#allocation8] sm:$0xff]  ;;  %vm87_vm2 = vcmask 162816   ;;  %s310_s13 = smov [#allocation10]  }
  0x15   :  { %133 = vmatpush.msra.mxu1 %v82_v2  ;;  %v80_v5 = vld [vmem:[#allocation2] sm:$0xff]  ;;  %v83_v6 = vld [vmem:[#allocation5] sm:$0xff]  ;;  %s151_s14 = sshll.u32 %s310_s13, 4  ;;  %s153_s17 = sshll.u32 %s364_s5, 4  ;;  %vm144_vm3 = vcmask 261120   ;;  %s152_s14 = int_to_ptr.vmem [resolvable:$true] %s151_s14  ;;  %s154_s17 = int_to_ptr.hbm [resolvable:$true] %s153_s17 }
  0x16   :  { %109 = vmatpush.msra.mxu0 %v85_v1  ;;  %v175_v8 = vld [vmem:[%s363_s4] ss:$0 sm:$0xff] }
  0x17   :  { %134 = vmatpush.msra.mxu1 %v81_v3 }
  0x18   :  { %167 = vmatmul.msk.f32.vlgmr.msra.gmra.mxu1 %vm115_vm1, %v80_v5  ;;  %110 = vmatpush.msra.mxu0 %v84_v4 }
  0x19   :  { %166 = vmatmul.msk.f32.vlgmr.msra.gmra.mxu0 %vm87_vm2, %v83_v6 }
  0x95   :  { %v136_v7 = vpop.f32.mrf.mxu1 }
  0x96   :  { %v112_v9 = vpop.f32.mrf.mxu0 }
  0x97   :  { %v137_v10 = vadd.f32 %v136_v7, %v112_v9 }
  0x99   :  { %v143_v11 = vadd.f32 %v175_v8, %v137_v10 }
  0x9b   :  { %145 = vst.msk [vmem:[#allocation10] sm:$0xff] %vm144_vm3, %v143_v11 }
  0x9c   :  { %156 = dma.vmem_to_hbm [thread:$0]  %s152_s14, 128, %s154_s17, [#allocation4]  }
  0x9d   :  { %302 = dma.done.wait [#allocation4], 128  }
  0x9e   :  { %303 = vsyncadd [#allocation4], 4294967168 }
  0x9f   :  { %161 = vsyncpa [#allocation3], 1 }
  0xa0   :  { %162 = vsyncpa [#allocation6], 1 }
  0xa1   :  { %163 = vsyncpa [#allocation9], 1 }
  0xa2   :  { %164 = vsyncpa [#allocation4], 1 }

</bundles_post_ra>
